<compile_context>
chip_gen: v5e
topology: v5e:2x2
jax: 0.10.0
libtpu: 0.0.40
codegen_flags: <defaults>
</compile_context>

<pallas_src>
import jax
import jax.numpy as jnp
from jax import lax
from jax.experimental import pallas as pl
from jax.experimental.pallas import tpu as pltpu

# ---- problem sizes (small, consistent with the module) ---------------------
B = 2            # batch
Hs = 16          # spatial height
Ws = 16          # spatial width
T = 3            # num_target_channels
S = 1            # num_static_channels (goal index channel)
HID = 12         # num_hidden_channels
C_TOTAL = 1 + T + S + HID        # 17 total channels
E = C_TOTAL - S                  # 16 = non-static (output) channels
P = 48           # perceiver output channels (3x3 conv)
U = 32           # updater hidden width (1x1 conv)
G = 8            # num_goals
FIRE_RATE = 0.5
ALIVE_THR = 0.1

# zero-padded 3x3 max-pool == the reference's -inf 'SAME' max-pool only
# because the threshold is positive and the comparison is strict '>'.
assert ALIVE_THR > 0.0

# padded / flattened working geometry (per batch element)
HP = Hs + 4                      # 20 padded rows (1 top, 3 bottom slack)
WP = Ws + 8                      # 24 padded cols -> 16*24 = 384 working lanes
LPAD = HP * WP                   # 480 flattened padded length per channel
LPAD_AL = 512                    # lane-aligned per-batch frame stride (4*128)
WORK = Hs * WP                   # 384 working lane width (multiple of 128)
OFF0 = WP + 1                    # 25 = flat offset of real pixel (0, 0)

C_AUG = C_TOTAL + 1              # 18 channels: [alive,target,hidden | static | noise]

# packed parameter slab (single VMEM operand); row offsets are multiples of 8
ROW_W1P = 0                      # (U, 9*E)  folded  w1 @ conv_weight
ROW_B1 = ROW_W1P + U             # (U, 1)
ROW_W2 = ROW_B1 + U              # (E, U)
ROW_B2 = ROW_W2 + E              # (E, 1)
ROW_EMB = ROW_B2 + E             # (E, G)   goal embedding, transposed
PROWS = ROW_EMB + E              # 112
PCOLS = 9 * E                    # 144


def make_goal_nca_kernel(nb):
    """Build the kernel for `nb` batch elements folded into the lane axis."""

    def kernel(x_ref, p_ref, out_ref, patch_ref):
        # x_ref:   (1, C_AUG, nb*LPAD_AL)  padded+flattened state (+ noise channel)
        # p_ref:   (PROWS, PCOLS)          packed parameters
        # out_ref: (1, E, nb*WORK)         updated non-static channels
        # patch:   (9*E, nb*WORK)          im2col scratch
        amax_parts, goal_parts, rnd_parts = [], [], []
        for b in range(nb):
            base = b * LPAD_AL
            col = b * WORK
            amax = None
            for ky in range(3):
                for kx in range(3):
                    off = ky * WP + kx                       # static lane offset of tap
                    piece = x_ref[0, 0:E, base + off:base + off + WORK]   # (E, WORK)
                    patch_ref[(ky * 3 + kx) * E:(ky * 3 + kx + 1) * E,
                              col:col + WORK] = piece
                    a = piece[0:1, :]                        # alive channel of this tap
                    amax = a if amax is None else jnp.maximum(amax, a)
            amax_parts.append(amax)
            goal_parts.append(x_ref[0, E:E + S, base + OFF0:base + OFF0 + WORK])
            rnd_parts.append(
                x_ref[0, E + S:E + S + 1, base + OFF0:base + OFF0 + WORK])

        def cat(parts):
            return parts[0] if nb == 1 else jnp.concatenate(parts, axis=1)

        amax = cat(amax_parts)                        # (1, nb*WORK) 3x3 alive max-pool
        goal_row = cat(goal_parts)                    # (1, nb*WORK) static goal channel
        rnd_row = cat(rnd_parts)                      # (1, nb*WORK) fire noise
        x_center = patch_ref[4 * E:5 * E, :]          # center tap = un-shifted channels

        # packed parameters (static sublane/lane slices of one operand)
        w1p = p_ref[ROW_W1P:ROW_W1P + U, :]           # (U, 9*E) folded w1 @ Wp
        b1 = p_ref[ROW_B1:ROW_B1 + U, 0:1]            # (U, 1)
        w2 = p_ref[ROW_W2:ROW_W2 + E, 0:U]            # (E, U)
        b2 = p_ref[ROW_B2:ROW_B2 + E, 0:1]            # (E, 1)
        embT = p_ref[ROW_EMB:ROW_EMB + E, 0:G]        # (E, G)

        # perceiver folded into updater conv1: h1 = relu((w1 @ Wp) @ patch + b1)
        # (On v7x this single K=144 matmul could become 9 MRB-accumulated
        #  K=16 tap matmuls, dropping the patch scratch round-trip.)
        h1 = jnp.maximum(
            jnp.dot(w1p, patch_ref[...], preferred_element_type=jnp.float32) + b1,
            0.0)                                                     # (U, nb*WORK)
        d_upd = jnp.dot(w2, h1, preferred_element_type=jnp.float32) + b2   # (E, nbW)

        # goal encodings: embedding lookup via emb^T @ one_hot(goal)
        # (truncating cast: goal indices must be exact integers in [0, G))
        gi = goal_row.astype(jnp.int32)
        oh = (lax.broadcasted_iota(jnp.int32, (G, nb * WORK), 0) == gi
              ).astype(jnp.float32)
        genc = jnp.dot(embT, oh, preferred_element_type=jnp.float32)       # (E, nbW)

        alive = amax > ALIVE_THR                      # (1, nb*WORK)
        fire = rnd_row < FIRE_RATE                    # (1, nb*WORK)
        mask = jnp.logical_and(alive, fire)
        # mask implies alive, so the reference's (genc * alive) folds into where().
        delta = jnp.where(mask, d_upd + genc, 0.0)    # (E, nb*WORK)

        out_ref[0, :, :] = x_center + delta           # dense, fully unmasked store

    return kernel


def _default_batches_per_step():
    """Fold the whole batch into the lane axis on single-TensorCore chips
    (v2/v3 per-core devices, v5e, v6e); keep one batch per 'parallel' grid
    step on multi-core chips (v4 megacore, v5p, v7x) so each TensorCore
    takes one batch element."""
    try:
        kind = jax.devices()[0].device_kind.lower()
    except Exception:
        return 1
    single_tc = any(t in kind for t in
                    ("v2", "v3", "v5 lite", "v5e", "v6 lite", "v6e"))
    return B if single_tc else 1


def goal_nca_forward(x_nchw, rnd, w_oihw, w1, b1, w2, b2, emb,
                     *, batches_per_step=None):
    nb = _default_batches_per_step() if batches_per_step is None else batches_per_step
    assert B % nb == 0
    x = x_nchw.astype(jnp.float32)

    # permute channels to [alive, target, hidden | static] and append the fire
    # noise as an extra (18th) channel so the state is a single operand.
    x_aug = jnp.concatenate(
        [x[:, :T + 1], x[:, T + 1 + S:], x[:, T + 1:T + 1 + S],
         rnd.astype(jnp.float32)], axis=1)                         # (B, 18, 16, 16)

    # zero-pad spatially, flatten, lane-align each batch frame, fold batches.
    x_pad = jnp.pad(x_aug, ((0, 0), (0, 0), (1, HP - Hs - 1), (1, WP - Ws - 1)))
    x_flat = jnp.pad(x_pad.reshape(B, C_AUG, LPAD),
                     ((0, 0), (0, 0), (0, LPAD_AL - LPAD)))        # (B, 18, 512)
    x_fold = (x_flat.reshape(B // nb, nb, C_AUG, LPAD_AL)
              .transpose(0, 2, 1, 3)
              .reshape(B // nb, C_AUG, nb * LPAD_AL))

    # fold the 3x3 perceiver weight into the first updater weight (exact:
    # the conv has no bias or nonlinearity before the 1x1 conv).
    wp_cm = jnp.transpose(w_oihw, (0, 2, 3, 1)).reshape(P, 9 * E)  # (P, 144)
    w1p = jnp.dot(w1, wp_cm)                                        # (U, 144)

    # pack all small parameters into one VMEM slab, sliced statically in-kernel.
    params = jnp.zeros((PROWS, PCOLS), jnp.float32)
    params = params.at[ROW_W1P:ROW_W1P + U, :].set(w1p)
    params = params.at[ROW_B1:ROW_B1 + U, 0].set(b1)
    params = params.at[ROW_W2:ROW_W2 + E, :U].set(w2)
    params = params.at[ROW_B2:ROW_B2 + E, 0].set(b2)
    params = params.at[ROW_EMB:ROW_EMB + E, :G].set(emb.T)

    out_fold = pl.pallas_call(
        make_goal_nca_kernel(nb),
        out_shape=jax.ShapeDtypeStruct((B // nb, E, nb * WORK), jnp.float32),
        grid_spec=pltpu.PrefetchScalarGridSpec(
            num_scalar_prefetch=0,
            grid=(B // nb,),
            in_specs=[
                pl.BlockSpec((1, C_AUG, nb * LPAD_AL), lambda g: (g, 0, 0)),
                pl.BlockSpec((PROWS, PCOLS), lambda g: (0, 0)),
            ],
            out_specs=pl.BlockSpec((1, E, nb * WORK), lambda g: (g, 0, 0)),
            scratch_shapes=[pltpu.VMEM((9 * E, nb * WORK), jnp.float32)],
        ),
        compiler_params=pltpu.CompilerParams(
            dimension_semantics=("parallel",)),        # multi-TC: 1 batch per core
    )(x_fold, params)

    # unfold batches, unpad, and re-attach the untouched static channel.
    out = (out_fold.reshape(B // nb, E, nb, WORK)
           .transpose(0, 2, 1, 3)
           .reshape(B, E, Hs, WP)[:, :, :, :Ws])
    return jnp.concatenate(
        [out[:, :T + 1], x[:, T + 1:T + 1 + S], out[:, T + 1:]], axis=1)


def reference_forward(x, rnd, w_oihw, w1, b1, w2, b2, emb):
    """Pure-JAX reference mirroring GoalNCA.forward semantics (NCHW)."""
    x = x.astype(jnp.float32)
    x_ns = jnp.concatenate([x[:, :T + 1], x[:, T + 1 + S:]], axis=1)     # (B,E,H,W)
    perc = lax.conv_general_dilated(
        x_ns, w_oihw, window_strides=(1, 1), padding='SAME',
        dimension_numbers=('NCHW', 'OIHW', 'NCHW'))                       # (B,P,H,W)
    h1 = jax.nn.relu(jnp.einsum('up,bphw->buhw', w1, perc) + b1.reshape(1, U, 1, 1))
    d_upd = jnp.einsum('eu,buhw->behw', w2, h1) + b2.reshape(1, E, 1, 1)  # (B,E,H,W)
    gi = x[:, T + 1].astype(jnp.int32)                                    # (B,H,W)
    genc = jnp.transpose(emb[gi], (0, 3, 1, 2))                           # (B,E,H,W)
    alive = lax.reduce_window(x[:, 0:1], -jnp.inf, lax.max,
                              (1, 1, 3, 3), (1, 1, 1, 1), 'SAME') > ALIVE_THR
    mask = jnp.logical_and(alive, rnd < FIRE_RATE)
    delta = d_upd + genc * alive.astype(jnp.float32)
    delta = jnp.where(mask, delta, 0.0)
    delta_full = jnp.concatenate(
        [delta[:, :T + 1], jnp.zeros((x.shape[0], S, Hs, Ws), jnp.float32),
         delta[:, T + 1:]], axis=1)
    return x + delta_full


if __name__ == "__main__":
    key = jax.random.PRNGKey(0)
    ks = jax.random.split(key, 10)

    # deterministic example input in NCHW (PyTorch convention)
    alive = (jax.random.uniform(ks[0], (B, 1, Hs, Ws)) > 0.4).astype(jnp.float32)
    target = 0.1 * jax.random.normal(ks[1], (B, T, Hs, Ws), dtype=jnp.float32)
    static = jax.random.randint(ks[2], (B, S, Hs, Ws), 0, G).astype(jnp.float32)
    hidden = 0.1 * jax.random.normal(ks[3], (B, HID, Hs, Ws), dtype=jnp.float32)
    x_nchw = jnp.concatenate([alive, target, static, hidden], axis=1)

    # stochastic-update noise (replaces torch.rand_like inside forward)
    rnd = jax.random.uniform(ks[4], (B, 1, Hs, Ws), dtype=jnp.float32)

    # deterministic synthetic parameters
    w_oihw = 0.1 * jax.random.normal(ks[5], (P, E, 3, 3), dtype=jnp.float32)  # perceiver 3x3
    w1 = 0.1 * jax.random.normal(ks[6], (U, P), dtype=jnp.float32)            # updater conv1
    b1 = 0.01 * jax.random.normal(ks[7], (U,), dtype=jnp.float32)
    w2 = 0.1 * jax.random.normal(ks[8], (E, U), dtype=jnp.float32)            # updater conv2
    b2 = jnp.zeros((E,), jnp.float32)
    emb = 0.1 * jax.random.normal(ks[9], (G, E), dtype=jnp.float32)           # goal embedding

    ref = reference_forward(x_nchw, rnd, w_oihw, w1, b1, w2, b2, emb)

    # default (generation-appropriate) batch layout
    out = goal_nca_forward(x_nchw, rnd, w_oihw, w1, b1, w2, b2, emb)
    out = jax.block_until_ready(out)
    assert out.shape == (B, C_TOTAL, Hs, Ws)
    assert jnp.allclose(out, ref, rtol=1e-4, atol=1e-4), float(
        jnp.max(jnp.abs(out - ref)))

    # also exercise the other batch layout so both variants stay correct
    other_nb = 1 if _default_batches_per_step() == B else B
    out2 = jax.block_until_ready(
        goal_nca_forward(x_nchw, rnd, w_oihw, w1, b1, w2, b2, emb,
                         batches_per_step=other_nb))
    assert jnp.allclose(out2, ref, rtol=1e-4, atol=1e-4), float(
        jnp.max(jnp.abs(out2 - ref)))

    print("KERNEL_OK")
</pallas_src>

<mosaic_0001>
module attributes {stable_mosaic.version = 11 : i64} {
  func.func @kernel(%arg0: i32, %arg1: memref<1x18x512xf32, #tpu.memory_space<vmem>>, %arg2: memref<112x144xf32, #tpu.memory_space<vmem>>, %arg3: memref<1x16x384xf32, #tpu.memory_space<vmem>>, %arg4: memref<144x384xf32, #tpu.memory_space<vmem>>) attributes {dimension_semantics = [#tpu.dimension_semantics<parallel>], iteration_bounds = array<i64: 2>, scalar_prefetch = 0 : i64, scratch_operands = 1 : i64, tpu.core_type = #tpu.core_type<tc>, window_params = [{transform_indices = @transform_0, window_bounds = array<i64: 1, 18, 512>}, {pipeline_mode = #tpu.pipeline_mode<synchronous>, transform_indices = @transform_1, window_bounds = array<i64: 112, 144>}, {transform_indices = @transform_2, window_bounds = array<i64: 1, 16, 384>}]} {
    %c0 = arith.constant 0 : index
    %c0_0 = arith.constant 0 : index
    %c0_1 = arith.constant 0 : index
    %0 = vector.load %arg1[%c0, %c0_0, %c0_1] : memref<1x18x512xf32, #tpu.memory_space<vmem>>, vector<1x16x384xf32>
    %1 = vector.shape_cast %0 : vector<1x16x384xf32> to vector<16x384xf32>
    %c0_2 = arith.constant 0 : index
    %c0_3 = arith.constant 0 : index
    %2 = vector.load %arg4[%c0_2, %c0_3] : memref<144x384xf32, #tpu.memory_space<vmem>>, vector<16x384xf32>
    tpu.vector_store %arg4[%c0_2, %c0_3], %1 {strides = array<i32>} : memref<144x384xf32, #tpu.memory_space<vmem>>, vector<16x384xf32>,
    %3 = vector.extract_strided_slice %1 {offsets = [0, 0], sizes = [1, 384], strides = [1, 1]} : vector<16x384xf32> to vector<1x384xf32>
    %c0_4 = arith.constant 0 : index
    %c0_5 = arith.constant 0 : index
    %c1 = arith.constant 1 : index
    %4 = vector.load %arg1[%c0_4, %c0_5, %c1] : memref<1x18x512xf32, #tpu.memory_space<vmem>>, vector<1x16x384xf32>
    %5 = vector.shape_cast %4 : vector<1x16x384xf32> to vector<16x384xf32>
    %c16 = arith.constant 16 : index
    %c0_6 = arith.constant 0 : index
    %6 = vector.load %arg4[%c16, %c0_6] : memref<144x384xf32, #tpu.memory_space<vmem>>, vector<16x384xf32>
    tpu.vector_store %arg4[%c16, %c0_6], %5 {strides = array<i32>} : memref<144x384xf32, #tpu.memory_space<vmem>>, vector<16x384xf32>,
    %7 = vector.extract_strided_slice %5 {offsets = [0, 0], sizes = [1, 384], strides = [1, 1]} : vector<16x384xf32> to vector<1x384xf32>
    %8 = arith.maximumf %3, %7 : vector<1x384xf32>
    %c0_7 = arith.constant 0 : index
    %c0_8 = arith.constant 0 : index
    %c2 = arith.constant 2 : index
    %9 = vector.load %arg1[%c0_7, %c0_8, %c2] : memref<1x18x512xf32, #tpu.memory_space<vmem>>, vector<1x16x384xf32>
    %10 = vector.shape_cast %9 : vector<1x16x384xf32> to vector<16x384xf32>
    %c32 = arith.constant 32 : index
    %c0_9 = arith.constant 0 : index
    %11 = vector.load %arg4[%c32, %c0_9] : memref<144x384xf32, #tpu.memory_space<vmem>>, vector<16x384xf32>
    tpu.vector_store %arg4[%c32, %c0_9], %10 {strides = array<i32>} : memref<144x384xf32, #tpu.memory_space<vmem>>, vector<16x384xf32>,
    %12 = vector.extract_strided_slice %10 {offsets = [0, 0], sizes = [1, 384], strides = [1, 1]} : vector<16x384xf32> to vector<1x384xf32>
    %13 = arith.maximumf %8, %12 : vector<1x384xf32>
    %c0_10 = arith.constant 0 : index
    %c0_11 = arith.constant 0 : index
    %c24 = arith.constant 24 : index
    %14 = vector.load %arg1[%c0_10, %c0_11, %c24] : memref<1x18x512xf32, #tpu.memory_space<vmem>>, vector<1x16x384xf32>
    %15 = vector.shape_cast %14 : vector<1x16x384xf32> to vector<16x384xf32>
    %c48 = arith.constant 48 : index
    %c0_12 = arith.constant 0 : index
    %16 = vector.load %arg4[%c48, %c0_12] : memref<144x384xf32, #tpu.memory_space<vmem>>, vector<16x384xf32>
    tpu.vector_store %arg4[%c48, %c0_12], %15 {strides = array<i32>} : memref<144x384xf32, #tpu.memory_space<vmem>>, vector<16x384xf32>,
    %17 = vector.extract_strided_slice %15 {offsets = [0, 0], sizes = [1, 384], strides = [1, 1]} : vector<16x384xf32> to vector<1x384xf32>
    %18 = arith.maximumf %13, %17 : vector<1x384xf32>
    %c0_13 = arith.constant 0 : index
    %c0_14 = arith.constant 0 : index
    %c25 = arith.constant 25 : index
    %19 = vector.load %arg1[%c0_13, %c0_14, %c25] : memref<1x18x512xf32, #tpu.memory_space<vmem>>, vector<1x16x384xf32>
    %20 = vector.shape_cast %19 : vector<1x16x384xf32> to vector<16x384xf32>
    %c64 = arith.constant 64 : index
    %c0_15 = arith.constant 0 : index
    %21 = vector.load %arg4[%c64, %c0_15] : memref<144x384xf32, #tpu.memory_space<vmem>>, vector<16x384xf32>
    tpu.vector_store %arg4[%c64, %c0_15], %20 {strides = array<i32>} : memref<144x384xf32, #tpu.memory_space<vmem>>, vector<16x384xf32>,
    %22 = vector.extract_strided_slice %20 {offsets = [0, 0], sizes = [1, 384], strides = [1, 1]} : vector<16x384xf32> to vector<1x384xf32>
    %23 = arith.maximumf %18, %22 : vector<1x384xf32>
    %c0_16 = arith.constant 0 : index
    %c0_17 = arith.constant 0 : index
    %c26 = arith.constant 26 : index
    %24 = vector.load %arg1[%c0_16, %c0_17, %c26] : memref<1x18x512xf32, #tpu.memory_space<vmem>>, vector<1x16x384xf32>
    %25 = vector.shape_cast %24 : vector<1x16x384xf32> to vector<16x384xf32>
    %c80 = arith.constant 80 : index
    %c0_18 = arith.constant 0 : index
    %26 = vector.load %arg4[%c80, %c0_18] : memref<144x384xf32, #tpu.memory_space<vmem>>, vector<16x384xf32>
    tpu.vector_store %arg4[%c80, %c0_18], %25 {strides = array<i32>} : memref<144x384xf32, #tpu.memory_space<vmem>>, vector<16x384xf32>,
    %27 = vector.extract_strided_slice %25 {offsets = [0, 0], sizes = [1, 384], strides = [1, 1]} : vector<16x384xf32> to vector<1x384xf32>
    %28 = arith.maximumf %23, %27 : vector<1x384xf32>
    %c0_19 = arith.constant 0 : index
    %c0_20 = arith.constant 0 : index
    %c48_21 = arith.constant 48 : index
    %29 = vector.load %arg1[%c0_19, %c0_20, %c48_21] : memref<1x18x512xf32, #tpu.memory_space<vmem>>, vector<1x16x384xf32>
    %30 = vector.shape_cast %29 : vector<1x16x384xf32> to vector<16x384xf32>
    %c96 = arith.constant 96 : index
    %c0_22 = arith.constant 0 : index
    %31 = vector.load %arg4[%c96, %c0_22] : memref<144x384xf32, #tpu.memory_space<vmem>>, vector<16x384xf32>
    tpu.vector_store %arg4[%c96, %c0_22], %30 {strides = array<i32>} : memref<144x384xf32, #tpu.memory_space<vmem>>, vector<16x384xf32>,
    %32 = vector.extract_strided_slice %30 {offsets = [0, 0], sizes = [1, 384], strides = [1, 1]} : vector<16x384xf32> to vector<1x384xf32>
    %33 = arith.maximumf %28, %32 : vector<1x384xf32>
    %c0_23 = arith.constant 0 : index
    %c0_24 = arith.constant 0 : index
    %c49 = arith.constant 49 : index
    %34 = vector.load %arg1[%c0_23, %c0_24, %c49] : memref<1x18x512xf32, #tpu.memory_space<vmem>>, vector<1x16x384xf32>
    %35 = vector.shape_cast %34 : vector<1x16x384xf32> to vector<16x384xf32>
    %c112 = arith.constant 112 : index
    %c0_25 = arith.constant 0 : index
    %36 = vector.load %arg4[%c112, %c0_25] : memref<144x384xf32, #tpu.memory_space<vmem>>, vector<16x384xf32>
    tpu.vector_store %arg4[%c112, %c0_25], %35 {strides = array<i32>} : memref<144x384xf32, #tpu.memory_space<vmem>>, vector<16x384xf32>,
    %37 = vector.extract_strided_slice %35 {offsets = [0, 0], sizes = [1, 384], strides = [1, 1]} : vector<16x384xf32> to vector<1x384xf32>
    %38 = arith.maximumf %33, %37 : vector<1x384xf32>
    %c0_26 = arith.constant 0 : index
    %c0_27 = arith.constant 0 : index
    %c50 = arith.constant 50 : index
    %39 = vector.load %arg1[%c0_26, %c0_27, %c50] : memref<1x18x512xf32, #tpu.memory_space<vmem>>, vector<1x16x384xf32>
    %40 = vector.shape_cast %39 : vector<1x16x384xf32> to vector<16x384xf32>
    %c128 = arith.constant 128 : index
    %c0_28 = arith.constant 0 : index
    %41 = vector.load %arg4[%c128, %c0_28] : memref<144x384xf32, #tpu.memory_space<vmem>>, vector<16x384xf32>
    tpu.vector_store %arg4[%c128, %c0_28], %40 {strides = array<i32>} : memref<144x384xf32, #tpu.memory_space<vmem>>, vector<16x384xf32>,
    %42 = vector.extract_strided_slice %40 {offsets = [0, 0], sizes = [1, 384], strides = [1, 1]} : vector<16x384xf32> to vector<1x384xf32>
    %43 = arith.maximumf %38, %42 : vector<1x384xf32>
    %c0_29 = arith.constant 0 : index
    %c16_30 = arith.constant 16 : index
    %c25_31 = arith.constant 25 : index
    %44 = vector.load %arg1[%c0_29, %c16_30, %c25_31] : memref<1x18x512xf32, #tpu.memory_space<vmem>>, vector<1x1x384xf32>
    %45 = vector.shape_cast %44 : vector<1x1x384xf32> to vector<1x384xf32>
    %c0_32 = arith.constant 0 : index
    %c17 = arith.constant 17 : index
    %c25_33 = arith.constant 25 : index
    %46 = vector.load %arg1[%c0_32, %c17, %c25_33] : memref<1x18x512xf32, #tpu.memory_space<vmem>>, vector<1x1x384xf32>
    %47 = vector.shape_cast %46 : vector<1x1x384xf32> to vector<1x384xf32>
    %c64_34 = arith.constant 64 : index
    %c0_35 = arith.constant 0 : index
    %48 = vector.load %arg4[%c64_34, %c0_35] : memref<144x384xf32, #tpu.memory_space<vmem>>, vector<16x384xf32>
    %c0_36 = arith.constant 0 : index
    %c0_37 = arith.constant 0 : index
    %49 = vector.load %arg2[%c0_36, %c0_37] : memref<112x144xf32, #tpu.memory_space<vmem>>, vector<32x144xf32>
    %c32_38 = arith.constant 32 : index
    %c0_39 = arith.constant 0 : index
    %50 = vector.load %arg2[%c32_38, %c0_39] : memref<112x144xf32, #tpu.memory_space<vmem>>, vector<32x1xf32>
    %c64_40 = arith.constant 64 : index
    %c0_41 = arith.constant 0 : index
    %51 = vector.load %arg2[%c64_40, %c0_41] : memref<112x144xf32, #tpu.memory_space<vmem>>, vector<16x32xf32>
    %c80_42 = arith.constant 80 : index
    %c0_43 = arith.constant 0 : index
    %52 = vector.load %arg2[%c80_42, %c0_43] : memref<112x144xf32, #tpu.memory_space<vmem>>, vector<16x1xf32>
    %c96_44 = arith.constant 96 : index
    %c0_45 = arith.constant 0 : index
    %53 = vector.load %arg2[%c96_44, %c0_45] : memref<112x144xf32, #tpu.memory_space<vmem>>, vector<16x8xf32>
    %c0_46 = arith.constant 0 : index
    %c0_47 = arith.constant 0 : index
    %54 = vector.load %arg4[%c0_46, %c0_47] : memref<144x384xf32, #tpu.memory_space<vmem>>, vector<144x384xf32>
    %cst = arith.constant dense<0.000000e+00> : vector<32x384xf32>
    %55 = tpu.matmul %49, %54, %cst {dimension_numbers = #tpu.dot_dimension_numbers<[1], [0], [0], [1], [0, 0, 1, 1], [], []>} : vector<32x144xf32>, vector<144x384xf32>, vector<32x384xf32> -> vector<32x384xf32>
    %56 = vector.broadcast %50 : vector<32x1xf32> to vector<32x384xf32>
    %57 = arith.addf %55, %56 : vector<32x384xf32>
    %cst_48 = arith.constant 0.000000e+00 : f32
    %58 = vector.broadcast %cst_48 : f32 to vector<32x384xf32>
    %59 = arith.maximumf %57, %58 : vector<32x384xf32>
    %cst_49 = arith.constant dense<0.000000e+00> : vector<16x384xf32>
    %60 = tpu.matmul %51, %59, %cst_49 {dimension_numbers = #tpu.dot_dimension_numbers<[1], [0], [0], [1], [0, 0, 1, 1], [], []>} : vector<16x32xf32>, vector<32x384xf32>, vector<16x384xf32> -> vector<16x384xf32>
    %61 = vector.broadcast %52 : vector<16x1xf32> to vector<16x384xf32>
    %62 = arith.addf %60, %61 : vector<16x384xf32>
    %63 = arith.fptosi %45 : vector<1x384xf32> to vector<1x384xi32>
    %64 = tpu.iota {dimensions = array<i32: 0>} : vector<8x384xi32>
    %65 = vector.broadcast %63 : vector<1x384xi32> to vector<8x384xi32>
    %66 = arith.cmpi eq, %64, %65 : vector<8x384xi32>
    %67 = arith.extui %66 : vector<8x384xi1> to vector<8x384xi32>
    %68 = arith.sitofp %67 : vector<8x384xi32> to vector<8x384xf32>
    %cst_50 = arith.constant dense<0.000000e+00> : vector<16x384xf32>
    %69 = tpu.matmul %53, %68, %cst_50 {dimension_numbers = #tpu.dot_dimension_numbers<[1], [0], [0], [1], [0, 0, 1, 1], [], []>} : vector<16x8xf32>, vector<8x384xf32>, vector<16x384xf32> -> vector<16x384xf32>
    %cst_51 = arith.constant 1.000000e-01 : f32
    %70 = vector.broadcast %cst_51 : f32 to vector<1x384xf32>
    %71 = arith.cmpf ogt, %43, %70 : vector<1x384xf32>
    %cst_52 = arith.constant 5.000000e-01 : f32
    %72 = vector.broadcast %cst_52 : f32 to vector<1x384xf32>
    %73 = arith.cmpf olt, %47, %72 : vector<1x384xf32>
    %74 = arith.andi %71, %73 : vector<1x384xi1>
    %75 = arith.addf %62, %69 : vector<16x384xf32>
    %cst_53 = arith.constant 0.000000e+00 : f32
    %76 = vector.shape_cast %74 : vector<1x384xi1> to vector<1x384xi1>
    %77 = vector.broadcast %76 : vector<1x384xi1> to vector<16x384xi1>
    %78 = vector.broadcast %cst_53 : f32 to vector<16x384xf32>
    %79 = arith.select %77, %75, %78 : vector<16x384xi1>, vector<16x384xf32>
    %80 = arith.addf %48, %79 : vector<16x384xf32>
    %c0_54 = arith.constant 0 : index
    %c0_55 = arith.constant 0 : index
    %c0_56 = arith.constant 0 : index
    %81 = vector.load %arg3[%c0_54, %c0_55, %c0_56] : memref<1x16x384xf32, #tpu.memory_space<vmem>>, vector<1x16x384xf32>
    %82 = vector.shape_cast %81 : vector<1x16x384xf32> to vector<16x384xf32>
    %83 = vector.shape_cast %80 : vector<16x384xf32> to vector<1x16x384xf32>
    tpu.vector_store %arg3[%c0_54, %c0_55, %c0_56], %83 {strides = array<i32>} : memref<1x16x384xf32, #tpu.memory_space<vmem>>, vector<1x16x384xf32>,
    return
  }
  func.func @transform_0(%arg0: i32) -> (i32, i32, i32) {
    %c0_i32 = arith.constant 0 : i32
    %c0_i32_0 = arith.constant 0 : i32
    %c0_i32_1 = arith.constant 0 : i32
    return %arg0, %c0_i32, %c0_i32_0 : i32, i32, i32
  }
  func.func @transform_1(%arg0: i32) -> (i32, i32) {
    %c0_i32 = arith.constant 0 : i32
    %c0_i32_0 = arith.constant 0 : i32
    %c0_i32_1 = arith.constant 0 : i32
    return %c0_i32, %c0_i32_0 : i32, i32
  }
  func.func @transform_2(%arg0: i32) -> (i32, i32, i32) {
    %c0_i32 = arith.constant 0 : i32
    %c0_i32_0 = arith.constant 0 : i32
    %c0_i32_1 = arith.constant 0 : i32
    return %arg0, %c0_i32, %c0_i32_0 : i32, i32, i32
  }
}

</mosaic_0001>

<bundles_post_ra>
// kernel: tpu_custom_call.1
= control target key start
LH: loop header
LB: loop body
LE: loop exit
PB: predicated region body
PF: predicated region fallthrough
CT: control target
= control target key end

     0   :  { %7 = vsyncpa [#allocation4], 0  ;;  %s2202_s0 = inlined_call_operand.vmem [shape: f32[2,18,512], index: 0, kind: input, shape index: {}]   ;;  %s2203_s1 = inlined_call_operand.vmem [shape: f32[112,144], index: 1, kind: input, shape index: {}]   ;;  %s2204_s2 = inlined_call_operand.hbm [shape: f32[2,16,384], index: 2, kind: output, shape index: {}]  }
   0x1   :  { %9 = vsyncpa [#allocation4 + $0x1], 0  ;;  %s1497_s9 = smov 0   ;;  %s1499_s10 = smov 0  }
   0x2   :  { %s1501_s11 = smov 0   ;;  %s1503_s12 = smov 0  }
   0x3 LB: > { %s1518_s13 = sadd.s32 4294967295, %s1468_s12   ;;  %s1223_s14 = sadd.s32 4294967294, %s1468_s12   ;;  %s1468_s12 = sphi %s1503_s12, %s2214_s12   ;;  %s1464_s11 = sphi %s1501_s11, %s2213_s11   ;;  %s1460_s10 = sphi %s1499_s10, %s2212_s10   ;;  %s1456_s9 = sphi %s1497_s9, %s2211_s9  }
   0x4   : > { %s1522_s15 = sadd.s32 1, %s1468_s12   ;;  %s69_s16 = sadd.s32 1, %s1464_s11 }
   0x5   : > { %s66_s17 = ssub.s32 %s1468_s12, %s1522_s15  ;;  %p79_p0 = scmp.ne.s32.totalorder %s1464_s11, %s1460_s10 }
   0x6   : > { %p67_p1 = scmp.eq.s32.totalorder %s66_s17, 0  ;;  %p80_p2 = scmp.eq.s32.totalorder %s1518_s13, 1 }
   0x7   : > { %p85_p3 = scmp.ne.s32.totalorder %s1460_s10, %s1456_s9  ;;  %p86_p4 = scmp.eq.s32.totalorder %s1223_s14, 1 }
   0x8   : > { %s1533_s18 = scalar_select %p67_p1, %s1464_s11, %s69_s16  }
   0x9   : > { %p1535_p5 = por %p80_p2, %p79_p0  ;;  %p1539_p6 = por %p86_p4, %p85_p3 }
   0xa   : > { %p1226_p7 = scmp.ge.s32.totalorder %s1468_s12, 1  ;;  %p115_p8 = scmp.lt.s32.totalorder %s1468_s12, 3 }
   0xc   : > { %p116_p9 = pnand %p1226_p7, %p115_p8 }
   0xd   : > { %p137_p10 = scmp.lt.s32.totalorder (!%p116_p9), %s1518_s13, 1  ;;  %s1470_s26 = smov (!%p116_p9), 79  }
   0xe   : > { %119 = sbr.rel (%p116_p9) target bundleno = 587 (0x24b), region = 28  ;;  %s1471_s27 = smov (!%p116_p9), 80  }
   0xf   : > { %s1472_s28 = smov (!%p116_p9), 102   ;;  %s1473_s29 = smov (!%p116_p9), 78  }
  0x10   : > { %s1474_s30 = smov (!%p116_p9), 103   ;;  %s1475_s3 = smov (!%p116_p9), 104  }
  0x11   : > { %s1476_s4 = smov (!%p116_p9), 126   ;;  %s1477_s5 = smov (!%p116_p9), 127  }
  0x12   : > { %s1276_s7 = smul.u32 (!%p116_p9), 48, %s1518_s13 }
  0x13   : > { %s138_s21 = scalar_select %p137_p10, %s1518_s13, 1  ;;  %v1478_v12 = vmov 0   ;;  %vm510_vm0 = vcmask 646144   ;;  %vm456_vm2 = vcmask 654336   ;;  %v974_v31 = vlaneseq  ;;  %v606_v39 = vld [vmem:[%s2203_s1 + $0x60] sm:$0xff]  ;;  %v605_v42 = vld [vmem:[%s2203_s1 + $0x50] sm:$0xff] }
  0x14   : > { %1394 = vset.pattern.permute.xlu1 %v1478_v12  ;;  %1393 = vset.pattern.permute.xlu0 %v1478_v12  ;;  %vm402_vm3 = vcmask 834560   ;;  %v607_v47 = vld [vmem:[%s2203_s1 + $0x70] sm:$0xff]  ;;  %v1479_v48 = vmov 0.0   ;;  %vm564_vm8 = vcmask 637952   ;;  %v604_v60 = vld [vmem:[%s2203_s1 + $0x40] sm:$0xff]  ;;  %vm348_vm10 = vcmask 842752   ;;  %s1157_s16 = scalar_lea.hbm %s2204_s2, %s1276_s7 }
  0x15   : > { %s1270_s22 = smul.u32 96, %s138_s21  ;;  %1395 = vset.pattern.permute.xlu2 %v1478_v12  ;;  %v975_v37 = vshrl.u32 %v974_v31, 7  ;;  %vm294_vm11 = vcmask 850944   ;;  %vm240_vm12 = vcmask 1031168   ;;  %vm688_vm13 = vcmask 130048   ;;  %s1160_s17 = sshll.u32 %s1157_s16, 4  ;;  %s1161_s17 = int_to_ptr.hbm [resolvable:$true] %s1160_s17 }
  0x16   : > { %vm186_vm14 = vcmask 1039360   ;;  %vm897_vm15 = vcmask 261120  }
  0x17   : > { %s1550_s25 = scalar_lea.vmem %s2202_s0, %s1270_s22  ;;  %s1420_s22 = sshra.s32 %s1161_s17, 4  ;;  %s1421_s22 = int_to_ptr.hbm [resolvable:$true] %s1420_s22 }
  0x18   : > { %v1553_v0 = vld [vmem:[%s1550_s25 + $0x10] sm:$0xff]  ;;  %v1556_v1 = vld [vmem:[%s1550_s25 + $0x8] sm:$0xff]  ;;  %v1582_v5 = vld [vmem:[%s1550_s25 + $0x20] sm:$0xff]  ;;  %s1422_s23 = scalar_lea.hbm %s1421_s22, 48  ;;  %p1427_p0 = scmp.lt.s32.totalorder %s1421_s22, %s2204_s2 }
  0x19   : > { %v1559_v2 = vld [vmem:[%s1550_s25 + $0x28] sm:$0xff]  ;;  %498 = vrot.lane.b32.xlu1 %v1553_v0, %s1470_s26  ;;  %442 = vrot.lane.b32.xlu2 %v1556_v1, %s1471_s27  ;;  %v1566_v3 = vld [vmem:[%s1550_s25 + $0x30] sm:$0xff]  ;;  %p1423_p11 = scmp.ne.s32.totalorder %s1421_s22, %s1422_s23 }
  0x1a   : > { %v1328_v4 = vpack.i.bf16 %v1566_v3, %v1559_v2  ;;  %v1585_v6 = vld [vmem:[%s1550_s25 + $0x38] sm:$0xff]  ;;  %v1594_v8 = vld [vmem:[%s1550_s25] sm:$0xff] }
  0x1b   : > { %v1343_v7 = vpack.i.bf16 %v1585_v6, %v1582_v5  ;;  %v481_v9 = vld [vmem:[%s1550_s25 + $0x18] sm:$0xff]  ;;  %p1424_p12 = pnand %p1423_p11, %p1535_p5 }
  0x1c   : > { %1329 = vrot.lane.b32.xlu0 %v1328_v4, %s1470_s26  ;;  %v1228_v19 = vld [vmem:[%s1550_s25 + $0x40] ss:$8 sm:$0xf]  ;;  %v1229_v55 = vld [vmem:[%s1550_s25 + $0x41] ss:$8 sm:$0xf] }
  0x1d   : > { %v1272_v22 = vceil.f32 %v1228_v19  ;;  %v1273_v23 = vfloor.f32 %v1228_v19  ;;  %vm1271_vm1 = vcmp.lt.s32.totalorder %v1228_v19, 0  ;;  %vm1089_vm9 = vcmp.lt.f32.partialorder %v1229_v55, 0.5  ;;  %p1425_p13 = pneg %p1424_p12 }
  0x1f   : > { %v1274_v30 = vsel %vm1271_vm1, %v1272_v22, %v1273_v23 }
  0x20   : > { %v1275_v32 = vcvt.f32.s32 %v1274_v30 }
  0x21   : > { %1334 = vrot.lane.b32.xlu1 %v1328_v4, %s1471_s27  ;;  %444 = vrot.lane.b32.xlu2 %v1553_v0, %s1471_s27 }
  0x22   : > { %v976_v35 = vperm.slane %v1275_v32, 0  ;;  %v977_v36 = vperm.slane %v1275_v32, 1  ;;  %v978_v40 = vperm.slane %v1275_v32, 2  ;;  %v979_v41 = vperm.slane %v1275_v32, 3 }
  0x24   : > { %496 = vrot.lane.b32.xlu0 %v1556_v1, %s1470_s26  ;;  %vm980_vm4 = vcmp.eq.s32.totalorder %v975_v37, %v976_v35  ;;  %vm981_vm5 = vcmp.eq.s32.totalorder %v975_v37, %v977_v36  ;;  %vm982_vm6 = vcmp.eq.s32.totalorder %v975_v37, %v978_v40  ;;  %vm983_vm7 = vcmp.eq.s32.totalorder %v975_v37, %v979_v41 }
  0x25   : > { %v1248_v49 = vsel %vm980_vm4, 1.0, %v1479_v48  ;;  %v1249_v50 = vsel %vm981_vm5, 1.0, %v1479_v48  ;;  %v1250_v56 = vsel %vm982_vm6, 1.0, %v1479_v48  ;;  %v1251_v57 = vsel %vm983_vm7, 1.0, %v1479_v48 }
  0x26   : > { %v1396_v58 = vpack.i.bf16 %v1249_v50, %v1248_v49  ;;  %v1401_v63 = vpack.i.bf16 %v1251_v57, %v1250_v56 }
  0x29   : > { %390 = vrot.lane.b32.xlu2 %v1553_v0, %s1472_s28  ;;  %388 = vrot.lane.b32.xlu1 %v1556_v1, %s1472_s28 }
  0x2c   : > { %1339 = vrot.lane.b32.xlu0 %v1328_v4, %s1472_s28 }
  0x31   : > { %1349 = vrot.lane.b32.xlu1 %v1328_v4, %s1473_s29  ;;  %342 = vrot.lane.b32.xlu2 %v1559_v2, %s1474_s30 }
  0x34   : > { %1344 = vrot.lane.b32.xlu0 %v1343_v7, %s1470_s26 }
  0x39   : > { %494 = vrot.lane.b32.xlu1 %v1594_v8, %s1470_s26  ;;  %550 = vrot.lane.b32.xlu2 %v1556_v1, %s1473_s29 }
  0x3c   : > { %344 = vrot.lane.b32.xlu0 %v1566_v3, %s1474_s30 }
  0x41   : > { %336 = vrot.lane.b32.xlu2 %v1553_v0, %s1474_s30  ;;  %334 = vrot.lane.b32.xlu1 %v1556_v1, %s1474_s30 }
  0x44   : > { %552 = vrot.lane.b32.xlu0 %v1553_v0, %s1473_s29 }
  0x49   : > { %556 = vrot.lane.b32.xlu1 %v1582_v5, %s1473_s29  ;;  %1359 = vrot.lane.b32.xlu2 %v1328_v4, %s1475_s3 }
  0x4c   : > { %1354 = vrot.lane.b32.xlu0 %v1343_v7, %s1471_s27 }
  0x51   : > { %548 = vrot.lane.b32.xlu1 %v1594_v8, %s1473_s29  ;;  %280 = vrot.lane.b32.xlu2 %v1556_v1, %s1475_s3 }
  0x54   : > { %440 = vrot.lane.b32.xlu0 %v1594_v8, %s1471_s27 }
  0x59   : > { %1364 = vrot.lane.b32.xlu1 %v1343_v7, %s1472_s28  ;;  %1369 = vrot.lane.b32.xlu2 %v1328_v4, %s1476_s4 }
  0x5c   : > { %282 = vrot.lane.b32.xlu0 %v1553_v0, %s1475_s3 }
  0x61   : > { %500 = vrot.lane.b32.xlu1 %v481_v9, %s1470_s26  ;;  %226 = vrot.lane.b32.xlu2 %v1556_v1, %s1476_s4  ;;  %s1426_s26 = scalar_lea.hbm %s2204_s2, 96 }
  0x62   : > { %p1428_p1 = scmp.lt.s32.totalorder %s1426_s26, %s1422_s23 }
  0x64   : > { %386 = vrot.lane.b32.xlu0 %v1594_v8, %s1472_s28  ;;  %p1429_p2 = por %p1428_p1, %p1427_p0 }
  0x66   : > { %p1430_p3 = pnand %p1429_p2, %p1425_p13 }
  0x69   : > { %340 = vrot.lane.b32.xlu1 %v1582_v5, %s1474_s30  ;;  %1374 = vrot.lane.b32.xlu2 %v1328_v4, %s1477_s5 }
  0x6c   : > { %228 = vrot.lane.b32.xlu0 %v1553_v0, %s1476_s4 }
  0x71   : > { %446 = vrot.lane.b32.xlu1 %v481_v9, %s1471_s27  ;;  %172 = vrot.lane.b32.xlu2 %v1556_v1, %s1477_s5 }
  0x73   : > { %v1636_v10 = vpop.permute.xlu2 %442 }
  0x74   : > { %332 = vrot.lane.b32.xlu0 %v1594_v8, %s1474_s30 }
  0x79   : > { %1379 = vrot.lane.b32.xlu1 %v1343_v7, %s1475_s3  ;;  %278 = vrot.lane.b32.xlu2 %v1594_v8, %s1475_s3 }
  0x7b   : > { %v1643_v11 = vpop.permute.xlu2 %444 }
  0x7c   : > { %174 = vrot.lane.b32.xlu0 %v1553_v0, %s1477_s5  ;;  %v1702_v33 = vsel %vm456_vm2, %v1636_v10, %v1643_v11 }
  0x81   : > { %1384 = vrot.lane.b32.xlu1 %v1343_v7, %s1476_s4  ;;  %346 = vrot.lane.b32.xlu2 %v1585_v6, %s1474_s30 }
  0x83   : > { %v1653_v13 = vpop.permute.xlu2 %390 }
  0x84   : > { %392 = vrot.lane.b32.xlu0 %v481_v9, %s1472_s28 }
  0x89   : > { %338 = vrot.lane.b32.xlu1 %v481_v9, %s1474_s30  ;;  %1389 = vrot.lane.b32.xlu2 %v1343_v7, %s1477_s5  ;;  %v1090_v7 = vsel %vm1089_vm9, 1, %v1478_v12 }
  0x8a   : > { %v1094_v37 = vperm.slane %v1090_v7, 3 }
  0x8b   : > { %v1658_v14 = vpop.permute.xlu1 %498  ;;  %v1660_v15 = vpop.permute.xlu2 %342 }
  0x8c   : > { %224 = vrot.lane.b32.xlu0 %v1594_v8, %s1476_s4 }
  0x8e   : > { %v1664_v16 = vpop.permute.xlu0 %1329 }
  0x8f   : > { %v1332_v17 = vunpack.i.h.bf16 %v1664_v16  ;;  %v1331_v18 = vunpack.i.l.bf16 %v1664_v16 }
  0x91   : > { %v515_v20 = vsel %vm510_vm0, %v1331_v18, %v1332_v17  ;;  %284 = vrot.lane.b32.xlu1 %v481_v9, %s1475_s3  ;;  %230 = vrot.lane.b32.xlu2 %v481_v9, %s1476_s4  ;;  %s134_s4 = sand.u32 1, %s1460_s10  }
  0x92   : > { %759 = vmatpush.msra.mxu2 %v515_v20  ;;  %v1091_v20 = vperm.slane %v1090_v7, 0  ;;  %s1146_s21 = scalar_lea.sflag [#allocation4], %s134_s4 }
  0x93   : > { %v1676_v21 = vpop.permute.xlu1 %1334  ;;  %v1682_v26 = vpop.permute.xlu2 %550 }
  0x94   : > { %v1337_v24 = vunpack.i.h.bf16 %v1676_v21  ;;  %v1336_v25 = vunpack.i.l.bf16 %v1676_v21  ;;  %170 = vrot.lane.b32.xlu0 %v1594_v8, %s1477_s5 }
  0x96   : > { %v1684_v27 = vpop.permute.xlu0 %496  ;;  %v461_v29 = vsel %vm456_vm2, %v1336_v25, %v1337_v24 }
  0x97   : > { %v1689_v28 = vsel %vm510_vm0, %v1684_v27, %v1658_v14 }
  0x98   : > { %760 = vmatpush.msra.mxu2 %v1689_v28 }
  0x99   : > { %176 = vrot.lane.b32.xlu1 %v481_v9, %s1477_s5  ;;  %554 = vrot.lane.b32.xlu2 %v481_v9, %s1473_s29  ;;  %s1269_s5 = smul.u32 48, %s134_s4 }
  0x9a   : > { %761 = vmatpush.msra.mxu2 %v461_v29 }
  0x9b   : > { %v1704_v34 = vpop.permute.xlu1 %388  ;;  %v1719_v45 = vpop.permute.xlu2 %336  ;;  %s2140_s6 = scalar_lea.vmem [#allocation3], %s1269_s5 }
  0x9c   : > { %762 = vmatpush.msra.mxu2 %v1702_v33  ;;  %562 = vrot.lane.b32.xlu0 %v1585_v6, %s1473_s29  ;;  %v1734_v52 = vsel %vm402_vm3, %v1704_v34, %v1653_v13  ;;  %s1158_s13 = sshll.u32 %s2140_s6, 4  ;;  %s1159_s13 = int_to_ptr.vmem [resolvable:$true] %s1158_s13 }
  0x9e   : > { %v1709_v38 = vpop.permute.xlu0 %1339 }
  0x9f   : > { %v1342_v43 = vunpack.i.h.bf16 %v1709_v38  ;;  %v1341_v44 = vunpack.i.l.bf16 %v1709_v38 }
  0xa1   : > { %v407_v46 = vsel %vm402_vm3, %v1341_v44, %v1342_v43  ;;  %680 = vperm.xlu1 %1394, %v606_v39   ;;  %675 = vperm.xlu2 %1395, %v605_v42  }
  0xa2   : > { %763 = vmatpush.msra.mxu2 %v407_v46 }
  0xa3   : > { %v1729_v51 = vpop.permute.xlu1 %1349  ;;  %v1750_v6 = vpop.permute.xlu2 %1359 }
  0xa4   : > { %v1352_v53 = vunpack.i.h.bf16 %v1729_v51  ;;  %v1351_v54 = vunpack.i.l.bf16 %v1729_v51  ;;  %685 = vperm.xlu0 %1393, %v607_v47   ;;  %764 = vmatpush.msra.mxu2 %v1734_v52  ;;  %v1362_v29 = vunpack.i.h.bf16 %v1750_v6  ;;  %v1361_v30 = vunpack.i.l.bf16 %v1750_v6 }
  0xa6   : > { %v1345_v59 = vpop.permute.xlu0 %1344  ;;  %v569_v61 = vsel %vm564_vm8, %v1351_v54, %v1352_v53  ;;  %v299_v36 = vsel %vm294_vm11, %v1361_v30, %v1362_v29 }
  0xa7   : > { %v1346_v62 = vunpack.i.l.bf16 %v1345_v59  ;;  %802 = vmatpush.msra.mxu3 %v569_v61  ;;  %v1347_v49 = vunpack.i.h.bf16 %v1345_v59 }
  0xa9   : > { %v514_v4 = vsel %vm510_vm0, %v1346_v62, %v1331_v18  ;;  %670 = vperm.xlu1 %1394, %v604_v60   ;;  %1397 = vrot.lane.b32.xlu2 %v1396_v58, %s1474_s30  ;;  %v1092_v18 = vperm.slane %v1090_v7, 1 }
  0xaa   : > { %701 = vmatpush.msra.mxu0 %v514_v4 }
  0xab   : > { %v495_v9 = vpop.permute.xlu1 %494  ;;  %v1773_v32 = vpop.permute.xlu2 %280 }
  0xac   : > { %1402 = vrot.lane.b32.xlu0 %v1401_v63, %s1474_s30  ;;  %v1756_v19 = vsel %vm510_vm0, %v495_v9, %v1684_v27  ;;  %v1093_v27 = vperm.slane %v1090_v7, 2 }
  0xad   : > { %702 = vmatpush.msra.mxu0 %v1756_v19 }
  0xae   : > { %v1759_v22 = vpop.permute.xlu0 %344 }
  0xaf   : > { %v1764_v23 = vsel %vm348_vm10, %v1660_v15, %v1759_v22 }
  0xb0   : > { %765 = vmatpush.msra.mxu2 %v1764_v23 }
  0xb1   : > { %1095 = vrot.lane.b32.xlu1 %v1091_v20, %s1474_s30  ;;  %1097 = vrot.lane.b32.xlu2 %v1092_v18, %s1474_s30 }
  0xb3   : > { %v1771_v31 = vpop.permute.xlu1 %334  ;;  %v1797_v46 = vpop.permute.xlu2 %1369 }
  0xb4   : > { %1099 = vrot.lane.b32.xlu0 %v1093_v27, %s1474_s30  ;;  %v1779_v35 = vsel %vm348_vm10, %v1771_v31, %v1719_v45 }
  0xb5   : > { %766 = vmatpush.msra.mxu2 %v1779_v35 }
  0xb6   : > { %v1787_v39 = vpop.permute.xlu0 %552 }
  0xb7   : > { %v1792_v40 = vsel %vm564_vm8, %v1682_v26, %v1787_v39  ;;  %767 = vmatpush.msra.mxu2 %v299_v36  ;;  %v1862_v36 = vld [vmem:[%s2203_s1 + $0x18] sm:$0xff] }
  0xb8   : > { %803 = vmatpush.msra.mxu3 %v1792_v40 }
  0xb9   : > { %1101 = vrot.lane.b32.xlu1 %v1094_v37, %s1474_s30 }
  0xbb   : > { %v557_v41 = vpop.permute.xlu1 %556  ;;  %v1814_v59 = vpop.permute.xlu2 %226 }
  0xbc   : > { %v568_v42 = vsel %vm564_vm8, %v557_v41, %v1351_v54  ;;  %v516_v54 = vsel %vm510_vm0, %v1332_v17, %v1347_v49 }
  0xbd   : > { %744 = vmatpush.msra.mxu1 %v568_v42 }
  0xbe   : > { %v1355_v47 = vpop.permute.xlu0 %1354 }
  0xbf   : > { %v1356_v48 = vunpack.i.l.bf16 %v1355_v47  ;;  %v1357_v63 = vunpack.i.h.bf16 %v1355_v47 }
  0xc1   : > { %v460_v50 = vsel %vm456_vm2, %v1356_v48, %v1336_v25  ;;  %v1372_v25 = vunpack.i.h.bf16 %v1797_v46  ;;  %v462_v18 = vsel %vm456_vm2, %v1337_v24, %v1357_v63 }
  0xc2   : > { %703 = vmatpush.msra.mxu0 %v460_v50 }
  0xc3   : > { %v549_v55 = vpop.permute.xlu1 %548  ;;  %v1835_v4 = vpop.permute.xlu2 %1374 }
  0xc4   : > { %v1804_v56 = vsel %vm564_vm8, %v549_v55, %v1682_v26  ;;  %v1371_v26 = vunpack.i.l.bf16 %v1797_v46  ;;  %v1376_v37 = vunpack.i.l.bf16 %v1835_v4 }
  0xc5   : > { %745 = vmatpush.msra.mxu1 %v1804_v56 }
  0xc6   : > { %v441_v57 = vpop.permute.xlu0 %440  ;;  %v245_v62 = vsel %vm240_vm12, %v1371_v26, %v1372_v25 }
  0xc7   : > { %817 = vmatpush.msrb.mxu1 %v516_v54  ;;  %v1812_v58 = vsel %vm456_vm2, %v441_v57, %v1636_v10 }
  0xc8   : > { %704 = vmatpush.msra.mxu0 %v1812_v58 }
  0xcb   : > { %v1365_v60 = vpop.permute.xlu1 %1364  ;;  %v1870_v21 = vpop.permute.xlu2 %172 }
  0xcc   : > { %v1366_v61 = vunpack.i.l.bf16 %v1365_v60  ;;  %v1367_v48 = vunpack.i.h.bf16 %v1365_v60 }
  0xce   : > { %v1819_v16 = vpop.permute.xlu0 %282  ;;  %v406_v17 = vsel %vm402_vm3, %v1366_v61, %v1341_v44  ;;  %v1840_v44 = vld [vmem:[%s2203_s1 + $0x8] sm:$0xff]  ;;  %v408_v57 = vsel %vm402_vm3, %v1342_v43, %v1367_v48 }
  0xcf   : > { %705 = vmatpush.msra.mxu0 %v406_v17  ;;  %v1827_v10 = vsel %vm294_vm11, %v1773_v32, %v1819_v16  ;;  %1230 = vmatmul.msk.f32.vlgmr.msra.gmra.mxu1 %vm688_vm13, %v1840_v44 }
  0xd0   : > { %768 = vmatpush.msra.mxu2 %v1827_v10  ;;  %1234 = vmatmul.msk.f32.vlgmr.msra.gmra.mxu3 %vm688_vm13, %v1840_v44 }
  0xd2   : > { %769 = vmatpush.msra.mxu2 %v245_v62 }
  0xd3   : > { %v501_v7 = vpop.permute.xlu1 %500  ;;  %v279_v55 = vpop.permute.xlu2 %278 }
  0xd4   : > { %v1848_v9 = vsel %vm510_vm0, %v1658_v14, %v501_v7  ;;  %v1377_v14 = vunpack.i.h.bf16 %v1835_v4  ;;  %v1928_v63 = vsel %vm294_vm11, %v279_v55, %v1773_v32  ;;  %v1960_v55 = vld [vmem:[%s2203_s1 + $0x10] sm:$0xff]  ;;  %vm1010_vm0 = vcmask 64512  }
  0xd5   : > { %818 = vmatpush.msrb.mxu1 %v1848_v9  ;;  %v611_v4 = vld [vmem:[%s2203_s1 + $0xb0] sm:$0xff] }
  0xd6   : > { %v387_v20 = vpop.permute.xlu0 %386  ;;  %v191_v47 = vsel %vm186_vm14, %v1376_v37, %v1377_v14  ;;  %894 = vperm.xlu0 %1393, %v611_v4  }
  0xd7   : > { %v1856_v27 = vsel %vm402_vm3, %v387_v20, %v1704_v34  ;;  %819 = vmatpush.msrb.mxu1 %v462_v18 }
  0xd8   : > { %706 = vmatpush.msra.mxu0 %v1856_v27  ;;  %1231 = vmatmul.msk.f32.gmra.mxu1 %vm688_vm13, %v1862_v36 }
  0xd9   : > { %1235 = vmatmul.msk.f32.gmra.mxu3 %vm688_vm13, %v1862_v36 }
  0xdb   : > { %v341_v41 = vpop.permute.xlu1 %340  ;;  %v347_v62 = vpop.permute.xlu2 %346 }
  0xdc   : > { %v1874_v24 = vsel %vm348_vm10, %v341_v41, %v1660_v15  ;;  %v1890_v15 = vld [vmem:[%s2203_s1 + $0x28] sm:$0xff]  ;;  %v1954_v48 = vsel %vm348_vm10, %v1759_v22, %v347_v62 }
  0xdd   : > { %707 = vmatpush.msra.mxu0 %v1874_v24 }
  0xde   : > { %v1877_v34 = vpop.permute.xlu0 %228 }
  0xdf   : > { %v242_v42 = vsel %vm240_vm12, %v1814_v59, %v1877_v34 }
  0xe0   : > { %770 = vmatpush.msra.mxu2 %v242_v42  ;;  %1232 = vmatmul.msk.f32.gmra.mxu1 %vm688_vm13, %v1890_v15 }
  0xe1   : > { %1236 = vmatmul.msk.f32.gmra.mxu3 %vm688_vm13, %v1890_v15 }
  0xe2   : > { %771 = vmatpush.msra.mxu2 %v191_v47 }
  0xe3   : > { %v447_v49 = vpop.permute.xlu1 %446 }
  0xe4   : > { %v1898_v50 = vsel %vm456_vm2, %v1643_v11, %v447_v49  ;;  %v1912_v11 = vld [vmem:[%s2203_s1 + $0x38] sm:$0xff]  ;;  %v1390_v49 = vpop.permute.xlu2 %1389 }
  0xe5   : > { %820 = vmatpush.msrb.mxu1 %v1898_v50 }
  0xe6   : > { %v333_v54 = vpop.permute.xlu0 %332 }
  0xe7   : > { %v1906_v60 = vsel %vm348_vm10, %v333_v54, %v1771_v31  ;;  %821 = vmatpush.msrb.mxu1 %v408_v57  ;;  %v1391_v54 = vunpack.i.l.bf16 %v1390_v49 }
  0xe8   : > { %708 = vmatpush.msra.mxu0 %v1906_v60  ;;  %1233 = vmatmul.msk.f32.gmra.mxu1 %vm688_vm13, %v1912_v11 }
  0xe9   : > { %1237 = vmatmul.msk.f32.gmra.mxu3 %vm688_vm13, %v1912_v11 }
  0xeb   : > { %v1380_v61 = vpop.permute.xlu1 %1379 }
  0xec   : > { %v1381_v38 = vunpack.i.l.bf16 %v1380_v61  ;;  %v231_v62 = vpop.permute.xlu2 %230 }
  0xee   : > { %v1918_v43 = vpop.permute.xlu0 %174  ;;  %v298_v31 = vsel %vm294_vm11, %v1381_v38, %v1361_v30  ;;  %v1938_v30 = vld [vmem:[%s2203_s1] sm:$0xff] }
  0xef   : > { %709 = vmatpush.msra.mxu0 %v298_v31  ;;  %v188_v17 = vsel %vm186_vm14, %v1870_v21, %v1918_v43  ;;  %v600_v31 = vld [vmem:[%s2203_s1 + $0x20] sm:$0xff] }
  0xf0   : > { %772 = vmatpush.msra.mxu2 %v188_v17  ;;  %v206_v7 = vmax.f32 %v1556_v1, %v188_v17 }
  0xf1   : > { %710 = vmatpush.msra.mxu0 %v1928_v63 }
  0xf2   : > { %773 = vmatpush.msra.mxu2 %v1559_v2  ;;  %v1933_v20 = vmax.f32 %v206_v7, %v242_v42 }
  0xf3   : > { %v1385_v18 = vpop.permute.xlu1 %1384 }
  0xf4   : > { %v1386_v41 = vunpack.i.l.bf16 %v1385_v18  ;;  %v314_v47 = vmax.f32 %v1933_v20, %v1827_v10  ;;  %774 = vmatpush.msra.mxu2 %v1556_v1  ;;  %v1382_v1 = vunpack.i.h.bf16 %v1380_v61  ;;  %v1387_v38 = vunpack.i.h.bf16 %v1385_v18 }
  0xf5   : > { %775 = vmatmul.f32.vlgmr.msra.gmra.mxu2 %v1938_v30  ;;  %v243_v18 = vsel %vm240_vm12, %v1877_v34, %v231_v62 }
  0xf6   : > { %v393_v32 = vpop.permute.xlu0 %392  ;;  %v244_v2 = vsel %vm240_vm12, %v1386_v41, %v1371_v26  ;;  %v300_v57 = vsel %vm294_vm11, %v1362_v29, %v1382_v1  ;;  %v1392_v29 = vunpack.i.h.bf16 %v1390_v49  ;;  %v246_v7 = vsel %vm240_vm12, %v1372_v25, %v1387_v38  ;;  %v602_v25 = vld [vmem:[%s2203_s1 + $0x30] sm:$0xff]  ;;  %v610_v49 = vld [vmem:[%s2203_s1 + $0xa0] sm:$0xff] }
  0xf7   : > { %711 = vmatpush.msra.mxu0 %v244_v2  ;;  %v1949_v42 = vsel %vm402_vm3, %v1653_v13, %v393_v32  ;;  %889 = vperm.xlu2 %1395, %v610_v49  }
  0xf8   : > { %822 = vmatpush.msrb.mxu1 %v1949_v42  ;;  %v192_v46 = vsel %vm186_vm14, %v1377_v14, %v1392_v29  ;;  %v555_v14 = vpop.permute.xlu2 %554 }
  0xfa   : > { %823 = vmatpush.msrb.mxu1 %v1954_v48 }
  0xfb   : > { %v339_v26 = vpop.permute.xlu1 %338 }
  0xfc   : > { %v1964_v13 = vsel %vm348_vm10, %v1719_v45, %v339_v26  ;;  %v190_v45 = vsel %vm186_vm14, %v1391_v54, %v1376_v37  ;;  %v567_v54 = vsel %vm564_vm8, %v1787_v39, %v555_v14 }
  0xfd   : > { %778 = vmatmul.f32.gmra.mxu2 %v1960_v55  ;;  %824 = vmatpush.msrb.mxu1 %v1964_v13 }
  0xfe   : > { %v225_v22 = vpop.permute.xlu0 %224 }
  0xff   : > { %v241_v61 = vsel %vm240_vm12, %v225_v22, %v1814_v59  ;;  %825 = vmatpush.msrb.mxu1 %v300_v57 }
 0x100   : > { %712 = vmatpush.msra.mxu0 %v241_v61 }
 0x102   : > { %713 = vmatpush.msra.mxu0 %v190_v45 }
 0x103   : > { %v285_v17 = vpop.permute.xlu1 %284 }
 0x104   : > { %v297_v6 = vsel %vm294_vm11, %v1819_v16, %v285_v17 }
 0x105   : > { %781 = vmatmul.f32.gmra.mxu2 %v600_v31  ;;  %826 = vmatpush.msrb.mxu1 %v297_v6 }
 0x106   : > { %v171_v59 = vpop.permute.xlu0 %170 }
 0x107   : > { %v187_v37 = vsel %vm186_vm14, %v171_v59, %v1870_v21  ;;  %827 = vmatpush.msrb.mxu1 %v246_v7 }
 0x108   : > { %714 = vmatpush.msra.mxu0 %v187_v37  ;;  %v205_v41 = vmax.f32 %v1594_v8, %v187_v37 }
 0x109   : > { %828 = vmatpush.msrb.mxu1 %v243_v18 }
 0x10a   : > { %715 = vmatpush.msra.mxu0 %v1582_v5  ;;  %v259_v16 = vmax.f32 %v205_v41, %v241_v61 }
 0x10b   : > { %v177_v21 = vpop.permute.xlu1 %176  ;;  %829 = vmatpush.msrb.mxu1 %v192_v46 }
 0x10c   : > { %v313_v32 = vmax.f32 %v259_v16, %v1928_v63  ;;  %716 = vmatpush.msra.mxu0 %v1594_v8  ;;  %v189_v34 = vsel %vm186_vm14, %v1918_v43, %v177_v21 }
 0x10d   : > { %717 = vmatmul.f32.vlgmr.msra.gmra.mxu0 %v1938_v30  ;;  %784 = vmatmul.f32.gmra.mxu2 %v602_v25  ;;  %v207_v5 = vmax.f32 %v1553_v0, %v189_v34 }
 0x10e   : > { %v2006_v2 = vmax.f32 %v313_v32, %v1906_v60  ;;  %830 = vmatpush.msrb.mxu1 %v189_v34  ;;  %v563_v63 = vpop.permute.xlu0 %562 }
 0x10f   : > { %v570_v8 = vsel %vm564_vm8, %v1352_v53, %v563_v63  ;;  %v261_v43 = vmax.f32 %v207_v5, %v243_v18 }
 0x110   : > { %v421_v1 = vmax.f32 %v2006_v2, %v1856_v27  ;;  %831 = vmatpush.msrb.mxu1 %v1566_v3  ;;  %860 = vmatpush.msrb.mxu3 %v570_v8 }
 0x111   : > { %v315_v26 = vmax.f32 %v261_v43, %v297_v6 }
 0x112   : > { %832 = vmatpush.msrb.mxu1 %v1553_v0  ;;  %861 = vmatpush.msrb.mxu3 %v567_v54 }
 0x113   : > { %v369_v51 = vmax.f32 %v315_v26, %v1964_v13  ;;  %833 = vmatmul.f32.vlgmr.msrb.gmra.mxu1 %v1938_v30  ;;  %1238 = vmatmul.msk.f32.vlgmr.msrb.gmra.mxu3 %vm688_vm13, %v1840_v44  ;;  %v2041_v61 = vpop.permute.xlu1 %680 }
 0x115   : > { %v423_v53 = vmax.f32 %v369_v51, %v1949_v42  ;;  %720 = vmatmul.f32.gmra.mxu0 %v1960_v55 }
 0x116   : > { %v2045_v17 = vpop.permute.xlu0 %685 }
 0x117   : > { %v477_v3 = vmax.f32 %v423_v53, %v1898_v50  ;;  %v2068_v53 = vld [vmem:[%s2203_s1 + $0x80] sm:$0xff] }
 0x119   : > { %v531_v22 = vmax.f32 %v477_v3, %v1848_v9  ;;  %v2073_v3 = vld [vmem:[%s2203_s1 + $0x90] sm:$0xff] }
 0x11b   : > { %v2028_v39 = vmax.f32 %v531_v22, %v567_v54  ;;  %836 = vmatmul.f32.gmra.mxu1 %v1960_v55  ;;  %1239 = vmatmul.msk.f32.gmra.mxu3 %vm688_vm13, %v1862_v36  ;;  %v2052_v7 = vpop.permute.xlu1 %670 }
 0x11d   : > { %723 = vmatmul.f32.gmra.mxu0 %v600_v31  ;;  %vm1088_vm8 = vcmp.gt.f32.partialorder %v2028_v39, 0.1 }
 0x11e   : > { %v2059_v34 = vpop.permute.xlu0 %1402 }
 0x11f   : > { %v1405_v8 = vunpack.i.h.bf16 %v2059_v34  ;;  %v1404_v43 = vunpack.i.l.bf16 %v2059_v34 }
 0x123   : > { %839 = vmatmul.f32.gmra.mxu1 %v600_v31  ;;  %1240 = vmatmul.msk.f32.gmra.mxu3 %vm688_vm13, %v1890_v15  ;;  %v2043_v31 = vpop.permute.xlu2 %675 }
 0x125   : > { %726 = vmatmul.f32.gmra.mxu0 %v602_v25 }
 0x126   : > { %v1100_v20 = vpop.permute.xlu0 %1099 }
 0x12b   : > { %842 = vmatmul.f32.gmra.mxu1 %v602_v25  ;;  %1241 = vmatmul.msk.f32.gmra.mxu3 %vm688_vm13, %v1912_v11  ;;  %v2057_v32 = vpop.permute.xlu2 %1397 }
 0x12c   : > { %v1400_v14 = vunpack.i.h.bf16 %v2057_v32  ;;  %v1399_v63 = vunpack.i.l.bf16 %v2057_v32 }
 0x12e   : > { %v1004_v22 = vsel %vm348_vm10, %v1399_v63, %v1400_v14 }
 0x14c   : > { %v2037_v0 = vpop.f32.mrf.mxu1 }
 0x153   : > { %v805_v44 = vpop.f32.mrf.mxu3 }
 0x155   : > { %v2039_v9 = vpop.f32.mrf.mxu1 }
 0x15c   : > { %v808_v30 = vpop.f32.mrf.mxu3 }
 0x15d   : > { %v753_v42 = vpop.f32.mrf.mxu1 }
 0x164   : > { %v811_v36 = vpop.f32.mrf.mxu3 }
 0x165   : > { %v756_v57 = vpop.f32.mrf.mxu1 }
 0x16c   : > { %v814_v38 = vpop.f32.mrf.mxu3 }
 0x178   : > { %v776_v50 = vpop.f32.mrf.mxu2 }
 0x179   : > { %v777_v18 = vadd.f32 %v776_v50, %v2052_v7 }
 0x17b   : > { %v806_v4 = vadd.f32 %v805_v44, %v777_v18  ;;  %v1006_v44 = vsel %vm348_vm10, %v1404_v43, %v1405_v8 }
 0x17d   : > { %v876_v51 = vmax.f32 %v806_v4, 0.0 }
 0x180   : > { %v779_v55 = vpop.f32.mrf.mxu2 }
 0x181   : > { %v780_v29 = vadd.f32 %v779_v55, %v2043_v31 }
 0x183   : > { %v809_v25 = vadd.f32 %v808_v30, %v780_v29 }
 0x185   : > { %v879_v26 = vmax.f32 %v809_v25, 0.0 }
 0x188   : > { %v782_v45 = vpop.f32.mrf.mxu2 }
 0x189   : > { %v783_v11 = vadd.f32 %v782_v45, %v2041_v61 }
 0x18a   : > { %v718_v15 = vpop.f32.mrf.mxu0 }
 0x18b   : > { %v812_v16 = vadd.f32 %v811_v36, %v783_v11  ;;  %v612_v11 = vld [vmem:[%s2203_s1 + $0xc0] sm:$0xff] }
 0x18d   : > { %v882_v5 = vmax.f32 %v812_v16, 0.0 }
 0x190   : > { %v785_v62 = vpop.f32.mrf.mxu2  ;;  %v2048_v6 = vpop.f32.mrf.mxu1 }
 0x191   : > { %v786_v59 = vadd.f32 %v785_v62, %v2045_v17  ;;  %v719_v62 = vadd.f32 %v718_v15, %v2052_v7  ;;  %v835_v4 = vadd.f32 %v2048_v6, %v2052_v7  ;;  %v368_v7 = vmax.f32 %v314_v47, %v1779_v35 }
 0x192   : > { %v721_v37 = vpop.f32.mrf.mxu0 }
 0x193   : > { %v815_v41 = vadd.f32 %v814_v38, %v786_v59  ;;  %v722_v45 = vadd.f32 %v721_v37, %v2043_v31 }
 0x195   : > { %v885_v46 = vmax.f32 %v815_v41, 0.0  ;;  %v751_v16 = vadd.f32 %v2039_v9, %v722_v45 }
 0x196   : > { %v2055_v21 = vpop.f32.mrf.mxu3 }
 0x197   : > { %939 = vmatpush.msrb.mxu2 %v885_v46  ;;  %1265 = vmatpush.msra.mxu3 %v885_v46  ;;  %v748_v46 = vadd.f32 %v2037_v0, %v719_v62  ;;  %v878_v32 = vmax.f32 %v751_v16, 0.0  ;;  %v1005_v0 = vsel %vm348_vm10, %v1400_v14, %v1404_v43 }
 0x198   : > { %v837_v49 = vpop.f32.mrf.mxu1 }
 0x199   : > { %940 = vmatpush.msrb.mxu2 %v882_v5  ;;  %1266 = vmatpush.msra.mxu3 %v882_v5  ;;  %v875_v9 = vmax.f32 %v748_v46, 0.0 }
 0x19a   : > { %v724_v54 = vpop.f32.mrf.mxu0 }
 0x19b   : > { %941 = vmatpush.msrb.mxu2 %v879_v26  ;;  %1267 = vmatpush.msra.mxu3 %v879_v26  ;;  %v725_v55 = vadd.f32 %v724_v54, %v2041_v61  ;;  %v1096_v26 = vpop.permute.xlu1 %1095  ;;  %v1098_v54 = vpop.permute.xlu2 %1097 }
 0x19d   : > { %942 = vmatpush.msrb.mxu2 %v876_v51  ;;  %1268 = vmatpush.msra.mxu3 %v876_v51  ;;  %v754_v59 = vadd.f32 %v753_v42, %v725_v55  ;;  %v613_v42 = vld [vmem:[%s2203_s1 + $0xd0] sm:$0xff] }
 0x19e   : > { %v866_v50 = vpop.f32.mrf.mxu3  ;;  %1244 = vmatmul.msk.f32.vlgmr.msrb.gmra.mxu2 %vm897_vm15, %v2068_v53  ;;  %1245 = vmatmul.msk.f32.vlgmr.msra.gmra.mxu3 %vm897_vm15, %v2073_v3 }
 0x19f   : > { %1032 = vmatpush.msrb.mxu3 %v1004_v22  ;;  %1078 = vmatpush.msra.mxu2 %v1006_v44  ;;  %v881_v37 = vmax.f32 %v754_v59, 0.0 }
 0x1a0   : > { %v840_v30 = vpop.f32.mrf.mxu1 }
 0x1a1   : > { %v841_v15 = vadd.f32 %v840_v30, %v2041_v61 }
 0x1a2   : > { %v727_v36 = vpop.f32.mrf.mxu0 }
 0x1a3   : > { %v728_v38 = vadd.f32 %v727_v36, %v2045_v17 }
 0x1a5   : > { %v757_v29 = vadd.f32 %v756_v57, %v728_v38  ;;  %v838_v57 = vadd.f32 %v837_v49, %v2043_v31  ;;  %v422_v49 = vmax.f32 %v368_v7, %v1734_v52  ;;  %v1104_v52 = vsel %vm348_vm10, %v1098_v54, %v1100_v20 }
 0x1a6   : > { %v869_v18 = vpop.f32.mrf.mxu3  ;;  %1252 = vmatmul.msk.f32.vlgmr.msrb.gmra.mxu3 %vm1010_vm0, %v612_v11  ;;  %1256 = vmatmul.msk.f32.vlgmr.msra.gmra.mxu2 %vm1010_vm0, %v612_v11  ;;  %vm1107_vm4 = vcmp.ne.s32.totalorder %v1104_v52, 0 }
 0x1a7   : > { %v884_v41 = vmax.f32 %v757_v29, 0.0  ;;  %v870_v63 = vadd.f32 %v869_v18, %v841_v15  ;;  %v867_v61 = vadd.f32 %v866_v50, %v838_v57 }
 0x1a8   : > { %v843_v25 = vpop.f32.mrf.mxu1 }
 0x1a9   : > { %916 = vmatpush.msrb.mxu0 %v884_v41  ;;  %1261 = vmatpush.msra.mxu1 %v884_v41  ;;  %v844_v34 = vadd.f32 %v843_v25, %v2045_v17  ;;  %v864_v17 = vadd.f32 %v2055_v21, %v835_v4  ;;  %v883_v14 = vmax.f32 %v870_v63, 0.0  ;;  %v880_v43 = vmax.f32 %v867_v61, 0.0 }
 0x1aa   : > { %v475_v21 = vmax.f32 %v421_v1, %v1812_v58 }
 0x1ab   : > { %917 = vmatpush.msrb.mxu0 %v881_v37  ;;  %1262 = vmatpush.msra.mxu1 %v881_v37  ;;  %v877_v6 = vmax.f32 %v864_v17, 0.0 }
 0x1ac   : > { %v529_v51 = vmax.f32 %v475_v21, %v1756_v19  ;;  %v1102_v19 = vpop.permute.xlu1 %1101 }
 0x1ad   : > { %918 = vmatpush.msrb.mxu0 %v878_v32  ;;  %1263 = vmatpush.msra.mxu1 %v878_v32  ;;  %v1105_v2 = vsel %vm348_vm10, %v1100_v20, %v1102_v19 }
 0x1ae   : > { %v872_v5 = vpop.f32.mrf.mxu3  ;;  %1253 = vmatmul.msk.f32.gmra.mxu3 %vm1010_vm0, %v613_v42  ;;  %1257 = vmatmul.msk.f32.gmra.mxu2 %vm1010_vm0, %v613_v42  ;;  %v583_v10 = vmax.f32 %v529_v51, %v1804_v56  ;;  %v890_v56 = vpop.permute.xlu2 %889  ;;  %vm1108_vm7 = vcmp.ne.s32.totalorder %v1105_v2, 0 }
 0x1af   : > { %v873_v8 = vadd.f32 %v872_v5, %v844_v34  ;;  %919 = vmatpush.msrb.mxu0 %v875_v9  ;;  %1264 = vmatpush.msra.mxu1 %v875_v9  ;;  %vm1111_vm9 = vmand %vm1088_vm8, %vm1108_vm7 }
 0x1b0   : > { %1242 = vmatmul.msk.f32.vlgmr.msrb.gmra.mxu0 %vm897_vm15, %v2068_v53  ;;  %1243 = vmatmul.msk.f32.vlgmr.msra.gmra.mxu1 %vm897_vm15, %v2073_v3  ;;  %vm1086_vm2 = vcmp.gt.f32.partialorder %v583_v10, 0.1  ;;  %v1120_v18 = vsel %vm1111_vm9, 1, %v1478_v12 }
 0x1b1   : > { %v886_v31 = vmax.f32 %v873_v8, 0.0  ;;  %1055 = vmatpush.msra.mxu0 %v1005_v0  ;;  %v1123_v32 = vperm.slane %v1120_v18, 0 }
 0x1b3   : > { %962 = vmatpush.msrb.mxu1 %v886_v31  ;;  %vm2153_vm12 = vcmp.eq.s32.totalorder %v1123_v32, 1 }
 0x1b5   : > { %963 = vmatpush.msrb.mxu1 %v883_v14 }
 0x1b7   : > { %964 = vmatpush.msrb.mxu1 %v880_v43 }
 0x1b8   : > { %1254 = vmatmul.msk.f32.vlgmr.msra.gmra.mxu0 %vm1010_vm0, %v612_v11 }
 0x1b9   : > { %965 = vmatpush.msrb.mxu1 %v877_v6 }
 0x1ba   : > { %1246 = vmatmul.msk.f32.vlgmr.msrb.gmra.mxu1 %vm897_vm15, %v2068_v53  ;;  %v476_v53 = vmax.f32 %v422_v49, %v1702_v33 }
 0x1bc   : > { %v530_v47 = vmax.f32 %v476_v53, %v1689_v28 }
 0x1be   : > { %v584_v58 = vmax.f32 %v530_v47, %v1792_v40  ;;  %v895_v40 = vpop.permute.xlu0 %894 }
 0x1c0   : > { %1255 = vmatmul.msk.f32.gmra.mxu0 %vm1010_vm0, %v613_v42  ;;  %vm1087_vm5 = vcmp.gt.f32.partialorder %v584_v58, 0.1 }
 0x1c1   : > { %vm1110_vm6 = vmand %vm1087_vm5, %vm1107_vm4 }
 0x1c2   : > { %1247 = vmatmul.msk.f32.gmra.mxu1 %vm897_vm15, %v2073_v3  ;;  %v1103_v3 = vsel %vm348_vm10, %v1096_v26, %v1098_v54  ;;  %v1119_v55 = vsel %vm1110_vm6, 1, %v1478_v12 }
 0x1c3   : > { %vm1106_vm1 = vcmp.ne.s32.totalorder %v1103_v3, 0  ;;  %v1122_v59 = vperm.slane %v1119_v55, 0 }
 0x1c4   : > { %vm1109_vm3 = vmand %vm1086_vm2, %vm1106_vm1 }
 0x1c5   : > { %v1118_v33 = vsel %vm1109_vm3, 1, %v1478_v12  ;;  %vm2144_vm11 = vcmp.eq.s32.totalorder %v1122_v59, 1 }
 0x1c6   : > { %v1121_v50 = vperm.slane %v1118_v33, 0 }
 0x1c8   : > { %vm1124_vm10 = vcmp.eq.s32.totalorder %v1121_v50, 1 }
 0x221   : > { %v947_v22 = vpop.f32.mrf.mxu3  ;;  %v944_v1 = vpop.f32.mrf.mxu2 }
 0x222   : > { %v945_v41 = vadd.f32 %v944_v1, %v890_v56  ;;  %v948_v9 = vadd.f32 %v947_v22, %v895_v40 }
 0x229   : > { %v1034_v27 = vpop.f32.mrf.mxu3  ;;  %v1080_v46 = vpop.f32.mrf.mxu2 }
 0x22d   : > { %v921_v28 = vpop.f32.mrf.mxu0  ;;  %v924_v44 = vpop.f32.mrf.mxu1 }
 0x22e   : > { %v922_v30 = vadd.f32 %v921_v28, %v890_v56  ;;  %v925_v45 = vadd.f32 %v924_v44, %v895_v40 }
 0x230   : > { %v1112_v36 = vadd.f32 %v1034_v27, %v922_v30 }
 0x231   : > { %v1037_v38 = vpop.f32.mrf.mxu3  ;;  %v1083_v8 = vpop.f32.mrf.mxu2 }
 0x232   : > { %v1115_v11 = vadd.f32 %v1037_v38, %v925_v45  ;;  %v1127_v62 = vsel %vm1124_vm10, %v1112_v36, 0.0 }
 0x233   : > { %v1133_v29 = vadd.f32 %v1127_v62, %v1906_v60 }
 0x234   : > { %v1130_v16 = vsel %vm1124_vm10, %v1115_v11, 0.0 }
 0x235   : > { %v1136_v37 = vadd.f32 %v1130_v16, %v1874_v24  ;;  %1139 = vst [vmem:[%s2140_s6] sm:$0xff] %v1133_v29  ;;  %v1057_v39 = vpop.f32.mrf.mxu0 }
 0x236   : > { %v1113_v25 = vadd.f32 %v1057_v39, %v945_v41 }
 0x237   : > { %1142 = vst [vmem:[%s2140_s6 + $0x18] sm:$0xff] %v1136_v37  ;;  %v967_v12 = vpop.f32.mrf.mxu1 }
 0x238   : > { %v1128_v24 = vsel %vm2144_vm11, %v1113_v25, 0.0  ;;  %v968_v42 = vadd.f32 %v967_v12, %v890_v56 }
 0x239   : > { %v1134_v57 = vadd.f32 %v1128_v24, %v1779_v35 }
 0x23a   : > { %v1114_v15 = vadd.f32 %v1080_v46, %v968_v42 }
 0x23b   : > { %1140 = vst [vmem:[%s2140_s6 + $0x8] sm:$0xff] %v1134_v57 }
 0x23c   : > { %v1129_v5 = vsel %vm2153_vm12, %v1114_v15, 0.0 }
 0x23d   : > { %v1135_v0 = vadd.f32 %v1129_v5, %v1964_v13  ;;  %v1060_v4 = vpop.f32.mrf.mxu0 }
 0x23e   : > { %v1116_v63 = vadd.f32 %v1060_v4, %v948_v9 }
 0x23f   : > { %1141 = vst [vmem:[%s2140_s6 + $0x10] sm:$0xff] %v1135_v0  ;;  %v970_v35 = vpop.f32.mrf.mxu1 }
 0x240   : > { %v1131_v61 = vsel %vm2144_vm11, %v1116_v63, 0.0  ;;  %v971_v31 = vadd.f32 %v970_v35, %v895_v40 }
 0x241   : > { %v1137_v17 = vadd.f32 %v1131_v61, %v1764_v23 }
 0x242   : > { %v1117_v13 = vadd.f32 %v1083_v8, %v971_v31 }
 0x243   : > { %1143 = vst [vmem:[%s2140_s6 + $0x20] sm:$0xff] %v1137_v17 }
 0x244   : > { %v1132_v14 = vsel %vm2153_vm12, %v1117_v13, 0.0 }
 0x245   : > { %v1138_v43 = vadd.f32 %v1132_v14, %v1954_v48 }
 0x247   : > { %1144 = vst [vmem:[%s2140_s6 + $0x28] sm:$0xff] %v1138_v43 }
 0x248   : > { %1433 = shalt.err (!%p1430_p3)
}
 0x249   : > { %s1480_s29 = smov 384   ;;  %s1481_s30 = smov 24  }
 0x24a   : > { %1277 = dma.vmem_to_hbm [thread:$0]  (%p1535_p5), %s1159_s13, 768, %s1161_s17, %s1146_s21, %s1480_s29, %s1480_s29, %s1481_s30  }
 0x24b PF: > { %p1283_p4 = scmp.ge.s32.totalorder %s1468_s12, 2  ;;  %s1175_s3 = sand.u32 1, %s1456_s9  }
 0x24c   : > { %s1176_s4 = scalar_lea.sflag [#allocation4], %s1175_s3 }
 0x24d   : > { %p1280_p7 = pnand %p1283_p4, %p1539_p6 }
 0x24f   : > { %p1281_p8 = pneg %p1280_p7 }
 0x251   : > { %1451 = dma.done.wait (%p1281_p8), %s1176_s4, 768  }
 0x252   : > { %1453 = vsyncadd (%p1281_p8), %s1176_s4, 4294966528  ;;  %p12_p9 = scmp.ge.s32.totalorder %s1522_s15, 4   ;;  %s2211_s9 = smov %s1460_s10 }
 0x253   : > { %s2212_s10 = smov %s1464_s11  ;;  %s2213_s11 = smov %s1533_s18 }
 0x254   : > { %s2214_s12 = smov %s1522_s15  ;;  %14 = sbr.rel (!%p12_p9) target bundleno = 3 (0x3), region = 65 }
 0x259   :  { %1182 = vsyncpa [#allocation4], 1 }
 0x25a   :  { %1184 = vsyncpa [#allocation4 + $0x1], 1 }

</bundles_post_ra>
